<compile_context>
chip_gen: v5e
topology: v5e:2x2
jax: 0.10.0
libtpu: 0.0.40
codegen_flags: <defaults>
</compile_context>

<pallas_src>
import jax
import jax.numpy as jnp
from jax import lax
from jax.experimental import pallas as pl
from jax.experimental.pallas import tpu as pltpu


def _linear_kernel(z_ref, w_ref, b_ref, o_ref):
    # logits = z @ W.T + b, contracting the LAST axis of both operands so the
    # weight stays in its native, lane-dense (out_dim, in_dim) layout.
    acc = lax.dot_general(
        z_ref[...], w_ref[...],
        dimension_numbers=(((1,), (1,)), ((), ())),
        preferred_element_type=jnp.float32,
    )
    o_ref[...] = (acc + b_ref[...]).astype(o_ref.dtype)


# Below this many rows the pallas_call fixed cost exceeds the work; use XLA.
_SMALL_N_FAST_PATH = 512


def clf_classic_forward(z, weight, bias, *, tile_n=1024, use_pallas=None,
                        core_parallel=False):
    """Pallas equivalent of clf_Classic.forward (a single nn.Linear).

    z:      (N, in_dim)        float32
    weight: (out_dim, in_dim)  float32  -- PyTorch layout, used natively (no transpose)
    bias:   (out_dim,)         float32
    returns logits (N, out_dim) float32

    use_pallas: None -> auto (XLA fast path for N < 512), True/False to force.
    core_parallel: request CORE_PARALLEL batch-axis semantics (v7x, 2 TCs);
                   only useful when N >= 2*tile_n so both cores get a tile.
    """
    n, in_dim = z.shape
    out_dim, in_dim_w = weight.shape
    assert in_dim == in_dim_w, "weight must be (out_dim, in_dim)"

    if use_pallas is None:
        use_pallas = n >= _SMALL_N_FAST_PATH
    if not use_pallas:
        # Launch/latency-bound regime: a single fused XLA op is strictly better.
        return z @ weight.T + bias

    b2 = bias.reshape(1, out_dim)  # (1, out_dim) for in-kernel broadcast

    # Tile the batch dim; weight + bias stay resident across grid steps
    # (constant index_map -> fetched once). z streaming is the only real lever:
    # AI ~2.5 flops/byte, so the kernel is HBM-bound on z.
    tn = n if n <= tile_n else tile_n
    if tn != n and tn % 8 != 0:          # (8,128) rule unless full-extent
        tn = max(8, (tn // 8) * 8)
    grid = (pl.cdiv(n, tn),)

    bytes_f32 = 4
    cost = pl.CostEstimate(
        flops=2 * n * in_dim * out_dim,
        bytes_accessed=(z.size + weight.size + bias.size + n * out_dim) * bytes_f32,
        transcendentals=0,
    )

    batch_sem = pltpu.CORE_PARALLEL if core_parallel else "parallel"

    return pl.pallas_call(
        _linear_kernel,
        out_shape=jax.ShapeDtypeStruct((n, out_dim), jnp.float32),
        grid_spec=pltpu.PrefetchScalarGridSpec(
            num_scalar_prefetch=0,
            grid=grid,
            in_specs=[
                pl.BlockSpec((tn, in_dim), lambda i: (i, 0)),        # z rows (streamed)
                pl.BlockSpec((out_dim, in_dim), lambda i: (0, 0)),   # full weight (resident)
                pl.BlockSpec((1, out_dim), lambda i: (0, 0)),        # bias (resident)
            ],
            out_specs=pl.BlockSpec((tn, out_dim), lambda i: (i, 0)),
        ),
        compiler_params=pltpu.CompilerParams(
            dimension_semantics=(batch_sem,),
            # tn=1024 -> ~13.6 MiB live (z double buffer 12.5 MiB + small padded
            # out/weight/bias). 48 MiB clears v5e's 16 MiB default scoped limit
            # and leaves headroom under v7x's 64 MiB physical VMEM.
            vmem_limit_bytes=48 * 1024 * 1024,
        ),
        cost_estimate=cost,
    )(z, weight, b2)


def init_params(key, in_dim, out_dim):
    """Deterministic init matching torch.nn.Linear defaults:
    U(-1/sqrt(in_dim), 1/sqrt(in_dim)) for both weight and bias."""
    kw, kb = jax.random.split(key)
    bound = 1.0 / (in_dim ** 0.5)
    weight = jax.random.uniform(kw, (out_dim, in_dim), jnp.float32, -bound, bound)
    bias = jax.random.uniform(kb, (out_dim,), jnp.float32, -bound, bound)
    return weight, bias


if __name__ == "__main__":
    IN_DIM, OUT_DIM = 1600, 5

    key = jax.random.PRNGKey(0)
    kz, kp, kz2 = jax.random.split(key, 3)
    weight, bias = init_params(kp, IN_DIM, OUT_DIM)

    # 1) Toy batch: force the Pallas path (the wrapper would normally take the
    #    small-N XLA fast path here) and also check the fast path itself.
    BATCH = 8
    z_small = jax.random.normal(kz, (BATCH, IN_DIM), jnp.float32)
    ref_small = z_small @ weight.T + bias

    logits_small = clf_classic_forward(z_small, weight, bias, use_pallas=True)
    jax.block_until_ready(logits_small)
    assert logits_small.shape == (BATCH, OUT_DIM)
    assert jnp.allclose(logits_small, ref_small, atol=1e-4, rtol=1e-4)

    logits_fast = clf_classic_forward(z_small, weight, bias)  # auto -> XLA fast path
    jax.block_until_ready(logits_fast)
    assert jnp.allclose(logits_fast, ref_small, atol=1e-4, rtol=1e-4)

    # 2) Non-divisible batch: N=1000 with tn=512 -> 2 grid steps, partial last tile.
    N_BIG = 1000
    z_big = jax.random.normal(kz2, (N_BIG, IN_DIM), jnp.float32)
    logits_big = clf_classic_forward(z_big, weight, bias, tile_n=512)
    jax.block_until_ready(logits_big)
    ref_big = z_big @ weight.T + bias
    assert logits_big.shape == (N_BIG, OUT_DIM)
    assert jnp.allclose(logits_big, ref_big, atol=1e-3, rtol=1e-3)

    # TODO(synk): clf_Classic.loss (CrossEntropyLoss) is not part of forward();
    # not implemented as a kernel here (a log-softmax epilogue could be fused
    # into _linear_kernel if logits are always consumed by the loss).

    print("KERNEL_OK")
</pallas_src>

<mosaic_0001>
module attributes {stable_mosaic.version = 11 : i64} {
  func.func @_linear_kernel(%arg0: i32, %arg1: memref<8x1600xf32, #tpu.memory_space<vmem>>, %arg2: memref<5x1600xf32, #tpu.memory_space<vmem>>, %arg3: memref<1x5xf32, #tpu.memory_space<vmem>>, %arg4: memref<8x5xf32, #tpu.memory_space<vmem>>) attributes {dimension_semantics = [#tpu.dimension_semantics<parallel>], iteration_bounds = array<i64: 1>, scalar_prefetch = 0 : i64, scratch_operands = 0 : i64, tpu.core_type = #tpu.core_type<tc>, window_params = [{transform_indices = @transform_0, window_bounds = array<i64: 8, 1600>}, {pipeline_mode = #tpu.pipeline_mode<synchronous>, transform_indices = @transform_1, window_bounds = array<i64: 5, 1600>}, {pipeline_mode = #tpu.pipeline_mode<synchronous>, transform_indices = @transform_2, window_bounds = array<i64: 1, 5>}, {transform_indices = @transform_3, window_bounds = array<i64: 8, 5>}]} {
    %c0 = arith.constant 0 : index
    %c0_0 = arith.constant 0 : index
    %0 = vector.load %arg1[%c0, %c0_0] : memref<8x1600xf32, #tpu.memory_space<vmem>>, vector<8x1600xf32>
    %c0_1 = arith.constant 0 : index
    %c0_2 = arith.constant 0 : index
    %1 = vector.load %arg2[%c0_1, %c0_2] : memref<5x1600xf32, #tpu.memory_space<vmem>>, vector<5x1600xf32>
    %cst = arith.constant dense<0.000000e+00> : vector<8x5xf32>
    %2 = tpu.matmul %0, %1, %cst {dimension_numbers = #tpu.dot_dimension_numbers<[1], [1], [0], [0], [0, 0, 1, 0], [], []>} : vector<8x1600xf32>, vector<5x1600xf32>, vector<8x5xf32> -> vector<8x5xf32>
    %c0_3 = arith.constant 0 : index
    %c0_4 = arith.constant 0 : index
    %3 = vector.load %arg3[%c0_3, %c0_4] : memref<1x5xf32, #tpu.memory_space<vmem>>, vector<1x5xf32>
    %4 = vector.broadcast %3 : vector<1x5xf32> to vector<8x5xf32>
    %5 = arith.addf %2, %4 : vector<8x5xf32>
    %c0_5 = arith.constant 0 : index
    %c0_6 = arith.constant 0 : index
    %6 = vector.load %arg4[%c0_5, %c0_6] : memref<8x5xf32, #tpu.memory_space<vmem>>, vector<8x5xf32>
    tpu.vector_store %arg4[%c0_5, %c0_6], %5 {strides = array<i32>} : memref<8x5xf32, #tpu.memory_space<vmem>>, vector<8x5xf32>,
    return
  }
  func.func @transform_0(%arg0: i32) -> (i32, i32) {
    %c0_i32 = arith.constant 0 : i32
    %c0_i32_0 = arith.constant 0 : i32
    return %arg0, %c0_i32 : i32, i32
  }
  func.func @transform_1(%arg0: i32) -> (i32, i32) {
    %c0_i32 = arith.constant 0 : i32
    %c0_i32_0 = arith.constant 0 : i32
    %c0_i32_1 = arith.constant 0 : i32
    return %c0_i32, %c0_i32_0 : i32, i32
  }
  func.func @transform_2(%arg0: i32) -> (i32, i32) {
    %c0_i32 = arith.constant 0 : i32
    %c0_i32_0 = arith.constant 0 : i32
    %c0_i32_1 = arith.constant 0 : i32
    return %c0_i32, %c0_i32_0 : i32, i32
  }
  func.func @transform_3(%arg0: i32) -> (i32, i32) {
    %c0_i32 = arith.constant 0 : i32
    %c0_i32_0 = arith.constant 0 : i32
    return %arg0, %c0_i32 : i32, i32
  }
}

</mosaic_0001>

<bundles_post_ra>
// kernel: tpu_custom_call.1
= control target key start
LH: loop header
LB: loop body
LE: loop exit
PB: predicated region body
PF: predicated region fallthrough
CT: control target
= control target key end

     0   :  { %8 = vsyncpa [#allocation3], 0  ;;  %s481_s0 = inlined_call_operand.hbm [shape: f32[8,1600], index: 0, kind: input, shape index: {}]   ;;  %s482_s1 = inlined_call_operand.hbm [shape: f32[5,1600], index: 1, kind: input, shape index: {}]   ;;  %s483_s2 = inlined_call_operand.vmem [shape: f32[1,5], index: 2, kind: input, shape index: {}]   ;;  %s484_s3 = inlined_call_operand.hbm [shape: f32[8,5], index: 3, kind: output, shape index: {}]  }
   0x1   :  { %9 = vsyncpa [#allocation6], 0 }
   0x2   :  { %10 = vsyncpa [#allocation4], 0  ;;  %s16_s14 = sshll.u32 %s481_s0, 4  ;;  %s444_s15 = smov [#allocation2]   ;;  %s17_s14 = int_to_ptr.hbm [resolvable:$true] %s16_s14 }
   0x3   :  { %s18_s16 = sshll.u32 %s444_s15, 4  ;;  %s27_s19 = sshll.u32 %s482_s1, 4  ;;  %s19_s16 = int_to_ptr.vmem [resolvable:$true] %s18_s16  ;;  %s28_s19 = int_to_ptr.hbm [resolvable:$true] %s27_s19 }
   0x4   :  { %21 = dma.hbm_to_vmem [thread:$0]  %s17_s14, 1664, %s19_s16, [#allocation3]  }
   0x5   :  { %s445_s20 = smov [#allocation5]  }
   0x6   :  { %s29_s21 = sshll.u32 %s445_s20, 4  ;;  %s30_s21 = int_to_ptr.vmem [resolvable:$true] %s29_s21 }
   0x7   :  { %32 = dma.hbm_to_vmem [thread:$0]  %s28_s19, 1664, %s30_s21, [#allocation6]  }
   0x8   :  { %438 = dma.done.wait [#allocation3], 1664  }
   0x9   :  { %439 = vsyncadd [#allocation3], 4294965632 }
   0xa   :  { %440 = dma.done.wait [#allocation6], 1664  }
   0xb   :  { %441 = vsyncadd [#allocation6], 4294965632  ;;  %v58_v0 = vld [vmem:[#allocation5 + $0x10] sm:$0x1f]  ;;  %v56_v1 = vld [vmem:[#allocation5] sm:$0x1f] }
   0xc   :  { %v59_v2 = vld [vmem:[#allocation5 + $0x18] sm:$0x1f]  ;;  %135 = vmatpush.xpose.msra.mxu2 %v58_v0  ;;  %95 = vmatpush.xpose.msra.mxu0 %v56_v1  ;;  %v45_v3 = vld [vmem:[#allocation2 + $0x10] sm:$0xff]  ;;  %v62_v4 = vld [vmem:[#allocation5 + $0x30] sm:$0x1f]  ;;  %vm73_vm0 = vcmask 523264  }
   0xd   :  { %v57_v5 = vld [vmem:[#allocation5 + $0x8] sm:$0x1f]  ;;  %155 = vmatpush.xpose.msra.mxu3 %v59_v2  ;;  %v43_v6 = vld [vmem:[#allocation2] sm:$0xff]  ;;  %v46_v7 = vld [vmem:[#allocation2 + $0x18] sm:$0xff]  ;;  %s349_s25 = sshll.u32 %s484_s3, 4  ;;  %vm340_vm1 = vcmask 39936   ;;  %s350_s25 = int_to_ptr.hbm [resolvable:$true] %s349_s25 }
   0xe   :  { %v60_v8 = vld [vmem:[#allocation5 + $0x20] sm:$0x1f]  ;;  %115 = vmatpush.xpose.msra.mxu1 %v57_v5  ;;  %v63_v9 = vld [vmem:[#allocation5 + $0x38] sm:$0x1f]  ;;  %v61_v11 = vld [vmem:[#allocation5 + $0x28] sm:$0x1f] }
   0xf   :  { %v44_v10 = vld [vmem:[#allocation2 + $0x8] sm:$0xff]  ;;  %136 = vmatmul.f32.vlgmr.msra.gmra.mxu2 %v45_v3  ;;  %96 = vmatmul.f32.vlgmr.msra.gmra.mxu0 %v43_v6  ;;  %v66_v12 = vld [vmem:[#allocation5 + $0x50] sm:$0x1f]  ;;  %v67_v14 = vld [vmem:[#allocation5 + $0x58] sm:$0x1f] }
  0x10   :  { %215 = vmatpush.xpose.msrb.mxu2 %v62_v4  ;;  %175 = vmatpush.xpose.msrb.mxu0 %v60_v8  ;;  %v64_v13 = vld [vmem:[#allocation5 + $0x40] sm:$0x1f]  ;;  %v65_v15 = vld [vmem:[#allocation5 + $0x48] sm:$0x1f]  ;;  %v47_v17 = vld [vmem:[#allocation2 + $0x20] sm:$0xff] }
  0x11   :  { %156 = vmatmul.f32.vlgmr.msra.gmra.mxu3 %v46_v7  ;;  %116 = vmatmul.f32.vlgmr.msra.gmra.mxu1 %v44_v10  ;;  %v49_v16 = vld [vmem:[#allocation2 + $0x30] sm:$0xff]  ;;  %v50_v18 = vld [vmem:[#allocation2 + $0x38] sm:$0xff]  ;;  %v68_v19 = vld [vmem:[#allocation5 + $0x60] sm:$0x1f] }
  0x12   :  { %195 = vmatpush.xpose.msrb.mxu1 %v61_v11  ;;  %235 = vmatpush.xpose.msrb.mxu3 %v63_v9  ;;  %v48_v20 = vld [vmem:[#allocation2 + $0x28] sm:$0xff]  ;;  %v53_v21 = vld [vmem:[#allocation2 + $0x50] sm:$0xff]  ;;  %v51_v22 = vld [vmem:[#allocation2 + $0x40] sm:$0xff] }
  0x13   :  { %v54_v23 = vld [vmem:[#allocation2 + $0x58] sm:$0xff]  ;;  %v52_v24 = vld [vmem:[#allocation2 + $0x48] sm:$0xff]  ;;  %v55_v25 = vld [vmem:[#allocation2 + $0x60] sm:$0xff] }
  0x14   :  { %295 = vmatpush.xpose.msra.mxu2 %v66_v12  ;;  %255 = vmatpush.xpose.msra.mxu0 %v64_v13  ;;  %v365_v26 = vld [vmem:[%s483_s2] ss:$0 sm:$0xff]  ;;  %s446_s2 = smov [#allocation7]  }
  0x15   :  { %s347_s22 = sshll.u32 %s446_s2, 4  ;;  %s348_s22 = int_to_ptr.vmem [resolvable:$true] %s347_s22 }
  0x16   :  { %315 = vmatpush.xpose.msra.mxu3 %v67_v14  ;;  %275 = vmatpush.xpose.msra.mxu1 %v65_v15 }
  0x17   :  { %216 = vmatmul.f32.vlgmr.msrb.gmra.mxu2 %v49_v16  ;;  %176 = vmatmul.f32.vlgmr.msrb.gmra.mxu0 %v47_v17 }
  0x18   :  { %360 = vmatpush.xpose.msk.msrb.mxu0 %vm73_vm0, %v68_v19 }
  0x19   :  { %236 = vmatmul.f32.vlgmr.msrb.gmra.mxu3 %v50_v18  ;;  %196 = vmatmul.f32.vlgmr.msrb.gmra.mxu1 %v48_v20 }
  0x1f   :  { %296 = vmatmul.f32.vlgmr.msra.gmra.mxu2 %v53_v21  ;;  %256 = vmatmul.f32.vlgmr.msra.gmra.mxu0 %v51_v22 }
  0x21   :  { %316 = vmatmul.f32.vlgmr.msra.gmra.mxu3 %v54_v23  ;;  %276 = vmatmul.f32.vlgmr.msra.gmra.mxu1 %v52_v24 }
  0x27   :  { %361 = vmatmul.msk.f32.vlgmr.msrb.gmra.mxu0 %vm73_vm0, %v55_v25 }
  0x8c   :  { %v97_v27 = vpop.f32.mrf.mxu0 }
  0x8d   :  { %v98_v28 = vadd.f32 %v365_v26, %v97_v27 }
  0x8e   :  { %v117_v29 = vpop.f32.mrf.mxu1 }
  0x8f   :  { %v118_v30 = vadd.f32 %v117_v29, %v98_v28 }
  0x92   :  { %v137_v31 = vpop.f32.mrf.mxu2 }
  0x93   :  { %v138_v32 = vadd.f32 %v137_v31, %v118_v30 }
  0x94   :  { %v157_v33 = vpop.f32.mrf.mxu3  ;;  %v177_v34 = vpop.f32.mrf.mxu0 }
  0x95   :  { %v158_v35 = vadd.f32 %v157_v33, %v138_v32 }
  0x96   :  { %v197_v36 = vpop.f32.mrf.mxu1 }
  0x97   :  { %v178_v37 = vadd.f32 %v177_v34, %v158_v35 }
  0x99   :  { %v198_v38 = vadd.f32 %v197_v36, %v178_v37 }
  0x9a   :  { %v217_v39 = vpop.f32.mrf.mxu2 }
  0x9b   :  { %v218_v40 = vadd.f32 %v217_v39, %v198_v38 }
  0x9c   :  { %v237_v41 = vpop.f32.mrf.mxu3  ;;  %v257_v42 = vpop.f32.mrf.mxu0 }
  0x9d   :  { %v238_v43 = vadd.f32 %v237_v41, %v218_v40 }
  0x9e   :  { %v277_v44 = vpop.f32.mrf.mxu1 }
  0x9f   :  { %v258_v45 = vadd.f32 %v257_v42, %v238_v43 }
  0xa1   :  { %v278_v46 = vadd.f32 %v277_v44, %v258_v45 }
  0xa2   :  { %v297_v47 = vpop.f32.mrf.mxu2 }
  0xa3   :  { %v298_v48 = vadd.f32 %v297_v47, %v278_v46 }
  0xa4   :  { %v317_v49 = vpop.f32.mrf.mxu3  ;;  %v337_v50 = vpop.f32.mrf.mxu0 }
  0xa5   :  { %v318_v51 = vadd.f32 %v317_v49, %v298_v48 }
  0xa7   :  { %v338_v52 = vadd.f32 %v337_v50, %v318_v51 }
  0xa9   :  { %341 = vst.msk [vmem:[#allocation7] sm:$0xff] %vm340_vm1, %v338_v52 }
  0xaa   :  { %352 = dma.vmem_to_hbm [thread:$0]  %s348_s22, 128, %s350_s25, [#allocation4]  }
  0xab   :  { %442 = dma.done.wait [#allocation4], 128  }
  0xac   :  { %443 = vsyncadd [#allocation4], 4294967168 }
  0xad   :  { %357 = vsyncpa [#allocation3], 1 }
  0xae   :  { %358 = vsyncpa [#allocation6], 1 }
  0xaf   :  { %359 = vsyncpa [#allocation4], 1 }

</bundles_post_ra>
